<compile_context>
chip_gen: v7x
topology: tpu7x:2x2x1
jax: 0.10.0
libtpu: 0.0.40
codegen_flags: <defaults>
</compile_context>

<pallas_src>
import math

import jax
import jax.numpy as jnp
from jax.experimental import pallas as pl
from jax.experimental.pallas import tpu as pltpu


# ----------------------------------------------------------------------------
# Pallas kernel: full MLP hot path + fused noisy-weight assembly
# ----------------------------------------------------------------------------
def _noisy_qnet_kernel(
    x_ref,                        # [TB, obs]            bf16
    w1_ref, b1_ref,               # [obs, H1], [1, H1]
    w2_ref, b2_ref,               # [H1, H2],  [1, H2]
    wn1_mu_ref, wn1_sg_ref,       # [H2, H1]   (pre-transposed mu / sigma)
    bn1_mu_ref, bn1_sg_ref,       # [1, H1]
    e1_outer_ref, e1_out_ref,     # [H2, H1]  (eps_in ⊗ eps_out),  [1, H1]
    wn2_mu_ref, wn2_sg_ref,       # [H1, A]
    bn2_mu_ref, bn2_sg_ref,       # [1, A]
    e2_outer_ref, e2_out_ref,     # [H1, A],  [1, A]
    out_ref,                      # [TB, A]               f32
):
    f32 = jnp.float32
    cdt = x_ref.dtype             # compute / I/O dtype (bf16)

    x = x_ref[...]

    # feature_layer: Linear -> ReLU -> Linear -> ReLU
    h = jnp.dot(x, w1_ref[...], preferred_element_type=f32) + b1_ref[...].astype(f32)
    h = jnp.maximum(h, 0.0).astype(cdt)

    h = jnp.dot(h, w2_ref[...], preferred_element_type=f32) + b2_ref[...].astype(f32)
    h = jnp.maximum(h, 0.0).astype(cdt)

    # NoisyLinear 1:  W_eff^T = mu^T + sigma^T * (eps_in ⊗ eps_out)
    #                 b_eff   = b_mu + b_sigma * eps_out
    w_eff1 = wn1_mu_ref[...] + wn1_sg_ref[...] * e1_outer_ref[...]
    b_eff1 = bn1_mu_ref[...].astype(f32) + bn1_sg_ref[...].astype(f32) * e1_out_ref[...].astype(f32)
    h = jnp.dot(h, w_eff1, preferred_element_type=f32) + b_eff1
    h = jnp.maximum(h, 0.0).astype(cdt)

    # NoisyLinear 2 (output head, narrow A columns; store is masked but tiny)
    w_eff2 = wn2_mu_ref[...] + wn2_sg_ref[...] * e2_outer_ref[...]
    b_eff2 = bn2_mu_ref[...].astype(f32) + bn2_sg_ref[...].astype(f32) * e2_out_ref[...].astype(f32)
    out = jnp.dot(h, w_eff2, preferred_element_type=f32) + b_eff2

    out_ref[...] = out.astype(out_ref.dtype)


_PARAM_NAMES = (
    "w1", "b1", "w2", "b2",
    "wn1_mu", "wn1_sigma", "bn1_mu", "bn1_sigma", "eps1_outer", "eps1_out",
    "wn2_mu", "wn2_sigma", "bn2_mu", "bn2_sigma", "eps2_outer", "eps2_out",
)


# ----------------------------------------------------------------------------
# Wrapper: batch-tiled pallas_call (or gridless for tiny batches)
# ----------------------------------------------------------------------------
def noisy_qnet_forward(x, params, *, batch_tile=2048, small_batch_cutoff=512):
    """x: [B, ...] -> flattened to [B, obs].  Returns [B, action_size] f32."""
    B = x.shape[0]
    cdt = params["w1"].dtype                      # bf16 compute / I/O dtype
    x = x.reshape(B, -1).astype(cdt)              # mirror module's reshape(B, -1)
    obs = x.shape[1]
    A = int(params["action_size"])

    weight_ops = tuple(params[name] for name in _PARAM_NAMES)

    if B <= small_batch_cutoff:
        # Tiny batch: no grid, no pipeline machinery — full arrays as VMEM blocks.
        return pl.pallas_call(
            _noisy_qnet_kernel,
            out_shape=jax.ShapeDtypeStruct((B, A), jnp.float32),
            in_specs=[pl.BlockSpec(memory_space=pltpu.MemorySpace.VMEM)]
            * (1 + len(weight_ops)),
            out_specs=pl.BlockSpec(memory_space=pltpu.MemorySpace.VMEM),
        )(x, *weight_ops)

    # Large batch: tile B over a parallel grid axis.  Force >=2 tiles and an
    # even tile target so the two v7x TensorCores stay balanced; no wrapper
    # padding — Pallas masks the ragged last block.
    n_tiles = max(2, -(-B // batch_tile))
    if n_tiles % 2:
        n_tiles += 1
    TB = -(-B // n_tiles)
    TB = -(-TB // 8) * 8                          # (8,128) sublane rule on block dim

    def batch_map(i):                             # x / out: walk the batch tiles
        return (i, 0)

    def resident_map(i):                          # weights: same block every tile
        return (0, 0)

    in_specs = [pl.BlockSpec((TB, obs), batch_map)]
    in_specs += [pl.BlockSpec(w.shape, resident_map) for w in weight_ops]
    out_spec = pl.BlockSpec((TB, A), batch_map)

    return pl.pallas_call(
        _noisy_qnet_kernel,
        out_shape=jax.ShapeDtypeStruct((B, A), jnp.float32),
        grid=(pl.cdiv(B, TB),),
        in_specs=in_specs,
        out_specs=out_spec,
        compiler_params=pltpu.CompilerParams(
            dimension_semantics=("parallel",),    # batch tiles split across TCs
        ),
    )(x, *weight_ops)


# ----------------------------------------------------------------------------
# Deterministic parameter construction (mirrors the module's __init__ / reset_noise)
# ----------------------------------------------------------------------------
def _uniform(key, shape, bound):
    return jax.random.uniform(key, shape, jnp.float32, -bound, bound)


def _scaled_noise(key, size):
    # f(x) = sign(x) * sqrt(|x|)   (factorized Gaussian noise helper)
    x = jax.random.normal(key, (size,), jnp.float32)
    return jnp.sign(x) * jnp.sqrt(jnp.abs(x))


def _linear(key, in_f, out_f):
    """nn.Linear-style init; returns (W[in,out], b[1,out])."""
    k_w, k_b = jax.random.split(key)
    bound = 1.0 / math.sqrt(in_f)
    w = _uniform(k_w, (out_f, in_f), bound)
    b = _uniform(k_b, (out_f,), bound)
    return w.T, b.reshape(1, out_f)


def _noisy_linear(key, in_f, out_f, std_init=0.5):
    """NoisyLinear params after reset_noise(), in kernel layout (pre-transposed).

    The eps outer product is precomputed once here (per reset_noise), not per
    forward call, matching the module where weight_epsilon = eps_out ⊗ eps_in
    is fixed between reset_noise() calls.
    """
    k_mu_w, k_mu_b, k_eps_in, k_eps_out = jax.random.split(key, 4)
    mu_range = 1.0 / math.sqrt(in_f)
    w_mu = _uniform(k_mu_w, (out_f, in_f), mu_range)
    w_sigma = jnp.full((out_f, in_f), std_init / math.sqrt(in_f), jnp.float32)
    b_mu = _uniform(k_mu_b, (out_f,), mu_range)
    b_sigma = jnp.full((out_f,), std_init / math.sqrt(out_f), jnp.float32)
    eps_in = _scaled_noise(k_eps_in, in_f)
    eps_out = _scaled_noise(k_eps_out, out_f)
    return dict(
        w_mu_t=w_mu.T,                             # [in, out]
        w_sigma_t=w_sigma.T,                       # [in, out]
        b_mu=b_mu.reshape(1, out_f),
        b_sigma=b_sigma.reshape(1, out_f),
        eps_outer=jnp.outer(eps_in, eps_out),      # [in, out] = (eps_out ⊗ eps_in)^T
        eps_out=eps_out.reshape(1, out_f),
    )


def make_params(key, obs_size, action_size, start_end_dim=32, emb_dim=64,
                std_init=0.5, dtype=jnp.bfloat16):
    H1, H2 = start_end_dim, emb_dim
    k1, k2, k3, k4 = jax.random.split(key, 4)
    w1, b1 = _linear(k1, obs_size, H1)
    w2, b2 = _linear(k2, H1, H2)
    n1 = _noisy_linear(k3, H2, H1, std_init)
    n2 = _noisy_linear(k4, H1, action_size, std_init)

    def c(a):
        return a.astype(dtype)

    return dict(
        action_size=action_size,
        w1=c(w1), b1=c(b1), w2=c(w2), b2=c(b2),
        wn1_mu=c(n1["w_mu_t"]), wn1_sigma=c(n1["w_sigma_t"]),
        bn1_mu=c(n1["b_mu"]), bn1_sigma=c(n1["b_sigma"]),
        eps1_outer=c(n1["eps_outer"]), eps1_out=c(n1["eps_out"]),
        wn2_mu=c(n2["w_mu_t"]), wn2_sigma=c(n2["w_sigma_t"]),
        bn2_mu=c(n2["b_mu"]), bn2_sigma=c(n2["b_sigma"]),
        eps2_outer=c(n2["eps_outer"]), eps2_out=c(n2["eps_out"]),
    )


# ----------------------------------------------------------------------------
# Pure-JAX reference (mirrors the module with the same bf16-in / f32-accum flow)
# ----------------------------------------------------------------------------
def reference_forward(x, p):
    B = x.shape[0]
    f32 = jnp.float32
    cdt = p["w1"].dtype
    x = x.reshape(B, -1).astype(cdt)

    h = jnp.dot(x, p["w1"], preferred_element_type=f32) + p["b1"].astype(f32)
    h = jnp.maximum(h, 0.0).astype(cdt)
    h = jnp.dot(h, p["w2"], preferred_element_type=f32) + p["b2"].astype(f32)
    h = jnp.maximum(h, 0.0).astype(cdt)

    w1e = p["wn1_mu"] + p["wn1_sigma"] * p["eps1_outer"]
    b1e = p["bn1_mu"].astype(f32) + p["bn1_sigma"].astype(f32) * p["eps1_out"].astype(f32)
    h = jnp.dot(h, w1e, preferred_element_type=f32) + b1e
    h = jnp.maximum(h, 0.0).astype(cdt)

    w2e = p["wn2_mu"] + p["wn2_sigma"] * p["eps2_outer"]
    b2e = p["bn2_mu"].astype(f32) + p["bn2_sigma"].astype(f32) * p["eps2_out"].astype(f32)
    return jnp.dot(h, w2e, preferred_element_type=f32) + b2e


if __name__ == "__main__":
    key = jax.random.PRNGKey(0)
    k_x, k_x2, k_p = jax.random.split(key, 3)

    batch = 2
    obs_size = 16          # flattened observation (e.g. 4x4)
    action_size = 4

    params = make_params(k_p, obs_size, action_size)

    # Small batch (gridless path) — observation fed unflattened, like the module.
    x = jax.random.normal(k_x, (batch, 4, 4), jnp.float32)
    out = jax.block_until_ready(noisy_qnet_forward(x, params))
    ref = reference_forward(x, params)
    assert out.shape == (batch, action_size)
    assert out.dtype == jnp.float32
    assert jnp.allclose(out, ref, atol=1e-2, rtol=1e-2), "mismatch (small batch)"

    # Larger batch (batch-tiled grid path, exercises the ragged last block +
    # parallel axis across TensorCores).
    big_b = 600
    x_big = jax.random.normal(k_x2, (big_b, obs_size), jnp.float32)
    out_big = jax.block_until_ready(noisy_qnet_forward(x_big, params))
    ref_big = reference_forward(x_big, params)
    assert out_big.shape == (big_b, action_size)
    assert jnp.allclose(out_big, ref_big, atol=1e-2, rtol=1e-2), "mismatch (big batch)"

    print("KERNEL_OK")
</pallas_src>

<mosaic_0001>
module attributes {stable_mosaic.version = 11 : i64} {
  func.func @_noisy_qnet_kernel(%arg0: memref<2x16xbf16, #tpu.memory_space<vmem>>, %arg1: memref<16x32xbf16, #tpu.memory_space<vmem>>, %arg2: memref<1x32xbf16, #tpu.memory_space<vmem>>, %arg3: memref<32x64xbf16, #tpu.memory_space<vmem>>, %arg4: memref<1x64xbf16, #tpu.memory_space<vmem>>, %arg5: memref<64x32xbf16, #tpu.memory_space<vmem>>, %arg6: memref<64x32xbf16, #tpu.memory_space<vmem>>, %arg7: memref<1x32xbf16, #tpu.memory_space<vmem>>, %arg8: memref<1x32xbf16, #tpu.memory_space<vmem>>, %arg9: memref<64x32xbf16, #tpu.memory_space<vmem>>, %arg10: memref<1x32xbf16, #tpu.memory_space<vmem>>, %arg11: memref<32x4xbf16, #tpu.memory_space<vmem>>, %arg12: memref<32x4xbf16, #tpu.memory_space<vmem>>, %arg13: memref<1x4xbf16, #tpu.memory_space<vmem>>, %arg14: memref<1x4xbf16, #tpu.memory_space<vmem>>, %arg15: memref<32x4xbf16, #tpu.memory_space<vmem>>, %arg16: memref<1x4xbf16, #tpu.memory_space<vmem>>, %arg17: memref<2x4xf32, #tpu.memory_space<vmem>>) attributes {dimension_semantics = [], scalar_prefetch = 0 : i64, scratch_operands = 0 : i64, tpu.core_type = #tpu.core_type<tc>} {
    %c0 = arith.constant 0 : index
    %c0_0 = arith.constant 0 : index
    %0 = vector.load %arg0[%c0, %c0_0] : memref<2x16xbf16, #tpu.memory_space<vmem>>, vector<2x16xbf16>
    %c0_1 = arith.constant 0 : index
    %c0_2 = arith.constant 0 : index
    %1 = vector.load %arg1[%c0_1, %c0_2] : memref<16x32xbf16, #tpu.memory_space<vmem>>, vector<16x32xbf16>
    %cst = arith.constant dense<0.000000e+00> : vector<2x32xf32>
    %2 = tpu.matmul %0, %1, %cst {dimension_numbers = #tpu.dot_dimension_numbers<[1], [0], [0], [1], [0, 0, 1, 1], [], []>} : vector<2x16xbf16>, vector<16x32xbf16>, vector<2x32xf32> -> vector<2x32xf32>
    %c0_3 = arith.constant 0 : index
    %c0_4 = arith.constant 0 : index
    %3 = vector.load %arg2[%c0_3, %c0_4] : memref<1x32xbf16, #tpu.memory_space<vmem>>, vector<1x32xbf16>
    %4 = arith.extf %3 : vector<1x32xbf16> to vector<1x32xf32>
    %5 = vector.broadcast %4 : vector<1x32xf32> to vector<2x32xf32>
    %6 = arith.addf %2, %5 : vector<2x32xf32>
    %cst_5 = arith.constant 0.000000e+00 : f32
    %7 = vector.broadcast %cst_5 : f32 to vector<2x32xf32>
    %8 = arith.maximumf %6, %7 : vector<2x32xf32>
    %9 = arith.truncf %8 : vector<2x32xf32> to vector<2x32xbf16>
    %c0_6 = arith.constant 0 : index
    %c0_7 = arith.constant 0 : index
    %10 = vector.load %arg3[%c0_6, %c0_7] : memref<32x64xbf16, #tpu.memory_space<vmem>>, vector<32x64xbf16>
    %cst_8 = arith.constant dense<0.000000e+00> : vector<2x64xf32>
    %11 = tpu.matmul %9, %10, %cst_8 {dimension_numbers = #tpu.dot_dimension_numbers<[1], [0], [0], [1], [0, 0, 1, 1], [], []>} : vector<2x32xbf16>, vector<32x64xbf16>, vector<2x64xf32> -> vector<2x64xf32>
    %c0_9 = arith.constant 0 : index
    %c0_10 = arith.constant 0 : index
    %12 = vector.load %arg4[%c0_9, %c0_10] : memref<1x64xbf16, #tpu.memory_space<vmem>>, vector<1x64xbf16>
    %13 = arith.extf %12 : vector<1x64xbf16> to vector<1x64xf32>
    %14 = vector.broadcast %13 : vector<1x64xf32> to vector<2x64xf32>
    %15 = arith.addf %11, %14 : vector<2x64xf32>
    %cst_11 = arith.constant 0.000000e+00 : f32
    %16 = vector.broadcast %cst_11 : f32 to vector<2x64xf32>
    %17 = arith.maximumf %15, %16 : vector<2x64xf32>
    %18 = arith.truncf %17 : vector<2x64xf32> to vector<2x64xbf16>
    %c0_12 = arith.constant 0 : index
    %c0_13 = arith.constant 0 : index
    %19 = vector.load %arg5[%c0_12, %c0_13] : memref<64x32xbf16, #tpu.memory_space<vmem>>, vector<64x32xbf16>
    %c0_14 = arith.constant 0 : index
    %c0_15 = arith.constant 0 : index
    %20 = vector.load %arg6[%c0_14, %c0_15] : memref<64x32xbf16, #tpu.memory_space<vmem>>, vector<64x32xbf16>
    %c0_16 = arith.constant 0 : index
    %c0_17 = arith.constant 0 : index
    %21 = vector.load %arg9[%c0_16, %c0_17] : memref<64x32xbf16, #tpu.memory_space<vmem>>, vector<64x32xbf16>
    %22 = arith.mulf %20, %21 : vector<64x32xbf16>
    %23 = arith.addf %19, %22 : vector<64x32xbf16>
    %c0_18 = arith.constant 0 : index
    %c0_19 = arith.constant 0 : index
    %24 = vector.load %arg7[%c0_18, %c0_19] : memref<1x32xbf16, #tpu.memory_space<vmem>>, vector<1x32xbf16>
    %25 = arith.extf %24 : vector<1x32xbf16> to vector<1x32xf32>
    %c0_20 = arith.constant 0 : index
    %c0_21 = arith.constant 0 : index
    %26 = vector.load %arg8[%c0_20, %c0_21] : memref<1x32xbf16, #tpu.memory_space<vmem>>, vector<1x32xbf16>
    %27 = arith.extf %26 : vector<1x32xbf16> to vector<1x32xf32>
    %c0_22 = arith.constant 0 : index
    %c0_23 = arith.constant 0 : index
    %28 = vector.load %arg10[%c0_22, %c0_23] : memref<1x32xbf16, #tpu.memory_space<vmem>>, vector<1x32xbf16>
    %29 = arith.extf %28 : vector<1x32xbf16> to vector<1x32xf32>
    %30 = arith.mulf %27, %29 : vector<1x32xf32>
    %31 = arith.addf %25, %30 : vector<1x32xf32>
    %cst_24 = arith.constant dense<0.000000e+00> : vector<2x32xf32>
    %32 = tpu.matmul %18, %23, %cst_24 {dimension_numbers = #tpu.dot_dimension_numbers<[1], [0], [0], [1], [0, 0, 1, 1], [], []>} : vector<2x64xbf16>, vector<64x32xbf16>, vector<2x32xf32> -> vector<2x32xf32>
    %33 = vector.broadcast %31 : vector<1x32xf32> to vector<2x32xf32>
    %34 = arith.addf %32, %33 : vector<2x32xf32>
    %cst_25 = arith.constant 0.000000e+00 : f32
    %35 = vector.broadcast %cst_25 : f32 to vector<2x32xf32>
    %36 = arith.maximumf %34, %35 : vector<2x32xf32>
    %37 = arith.truncf %36 : vector<2x32xf32> to vector<2x32xbf16>
    %c0_26 = arith.constant 0 : index
    %c0_27 = arith.constant 0 : index
    %38 = vector.load %arg11[%c0_26, %c0_27] : memref<32x4xbf16, #tpu.memory_space<vmem>>, vector<32x4xbf16>
    %c0_28 = arith.constant 0 : index
    %c0_29 = arith.constant 0 : index
    %39 = vector.load %arg12[%c0_28, %c0_29] : memref<32x4xbf16, #tpu.memory_space<vmem>>, vector<32x4xbf16>
    %c0_30 = arith.constant 0 : index
    %c0_31 = arith.constant 0 : index
    %40 = vector.load %arg15[%c0_30, %c0_31] : memref<32x4xbf16, #tpu.memory_space<vmem>>, vector<32x4xbf16>
    %41 = arith.mulf %39, %40 : vector<32x4xbf16>
    %42 = arith.addf %38, %41 : vector<32x4xbf16>
    %c0_32 = arith.constant 0 : index
    %c0_33 = arith.constant 0 : index
    %43 = vector.load %arg13[%c0_32, %c0_33] : memref<1x4xbf16, #tpu.memory_space<vmem>>, vector<1x4xbf16>
    %44 = arith.extf %43 : vector<1x4xbf16> to vector<1x4xf32>
    %c0_34 = arith.constant 0 : index
    %c0_35 = arith.constant 0 : index
    %45 = vector.load %arg14[%c0_34, %c0_35] : memref<1x4xbf16, #tpu.memory_space<vmem>>, vector<1x4xbf16>
    %46 = arith.extf %45 : vector<1x4xbf16> to vector<1x4xf32>
    %c0_36 = arith.constant 0 : index
    %c0_37 = arith.constant 0 : index
    %47 = vector.load %arg16[%c0_36, %c0_37] : memref<1x4xbf16, #tpu.memory_space<vmem>>, vector<1x4xbf16>
    %48 = arith.extf %47 : vector<1x4xbf16> to vector<1x4xf32>
    %49 = arith.mulf %46, %48 : vector<1x4xf32>
    %50 = arith.addf %44, %49 : vector<1x4xf32>
    %cst_38 = arith.constant dense<0.000000e+00> : vector<2x4xf32>
    %51 = tpu.matmul %37, %42, %cst_38 {dimension_numbers = #tpu.dot_dimension_numbers<[1], [0], [0], [1], [0, 0, 1, 1], [], []>} : vector<2x32xbf16>, vector<32x4xbf16>, vector<2x4xf32> -> vector<2x4xf32>
    %52 = vector.broadcast %50 : vector<1x4xf32> to vector<2x4xf32>
    %53 = arith.addf %51, %52 : vector<2x4xf32>
    %c0_39 = arith.constant 0 : index
    %c0_40 = arith.constant 0 : index
    %54 = vector.load %arg17[%c0_39, %c0_40] : memref<2x4xf32, #tpu.memory_space<vmem>>, vector<2x4xf32>
    tpu.vector_store %arg17[%c0_39, %c0_40], %53 {strides = array<i32>} : memref<2x4xf32, #tpu.memory_space<vmem>>, vector<2x4xf32>,
    return
  }
}

</mosaic_0001>

<bundles_post_ra>
// kernel: tpu_custom_call.1
= control target key start
LH: loop header
LB: loop body
LE: loop exit
PB: predicated region body
PF: predicated region fallthrough
CT: control target
= control target key end

     0   :  { %s776_s0 = inlined_call_operand.vmem [shape: bf16[2,16], index: 0, kind: input, shape index: {}]   ;;  %s777_s1 = inlined_call_operand.vmem [shape: bf16[16,32], index: 1, kind: input, shape index: {}]   ;;  %s778_s2 = inlined_call_operand.vmem [shape: bf16[1,32], index: 2, kind: input, shape index: {}]   ;;  %s779_s3 = inlined_call_operand.vmem [shape: bf16[32,64], index: 3, kind: input, shape index: {}]   ;;  %s780_s4 = inlined_call_operand.vmem [shape: bf16[1,64], index: 4, kind: input, shape index: {}]   ;;  %s781_s5 = inlined_call_operand.vmem [shape: bf16[64,32], index: 5, kind: input, shape index: {}]   ;;  %s782_s6 = inlined_call_operand.vmem [shape: bf16[64,32], index: 6, kind: input, shape index: {}]   ;;  %s783_s7 = inlined_call_operand.vmem [shape: bf16[1,32], index: 7, kind: input, shape index: {}]   ;;  %s784_s8 = inlined_call_operand.vmem [shape: bf16[1,32], index: 8, kind: input, shape index: {}]   ;;  %s785_s9 = inlined_call_operand.vmem [shape: bf16[64,32], index: 9, kind: input, shape index: {}]   ;;  %s786_s10 = inlined_call_operand.vmem [shape: bf16[1,32], index: 10, kind: input, shape index: {}]   ;;  %s787_s11 = inlined_call_operand.vmem [shape: bf16[32,4], index: 11, kind: input, shape index: {}]   ;;  %s788_s12 = inlined_call_operand.vmem [shape: bf16[32,4], index: 12, kind: input, shape index: {}]   ;;  %s789_s13 = inlined_call_operand.vmem [shape: bf16[1,4], index: 13, kind: input, shape index: {}]   ;;  %s790_s14 = inlined_call_operand.vmem [shape: bf16[1,4], index: 14, kind: input, shape index: {}]   ;;  %s791_s15 = inlined_call_operand.vmem [shape: bf16[32,4], index: 15, kind: input, shape index: {}]   ;;  %s792_s16 = inlined_call_operand.vmem [shape: bf16[1,4], index: 16, kind: input, shape index: {}]   ;;  %s793_s17 = inlined_call_operand.hbm [shape: f32[2,4], index: 17, kind: output, shape index: {}]  }
   0x1   :  { %794 = sst [smem:[#allocation5_spill]] %s776_s0 }
   0x2   :  { %795 = sst [smem:[#allocation6_spill]] %s777_s1 }
   0x3   :  { %s796_s26 = sld [smem:[#allocation6_spill]]  ;;  %v502_v1 = vmov 0.0   ;;  %s797_s29 = sld [smem:[#allocation5_spill]]  ;;  %vm503_vm0 = vmmov 0   ;;  %vm73_vm1 = vcmask 130048  }
   0x4   :  { %438 = vmatprep.subr.bf16.mxu0 %v502_v1  ;;  %444 = vmatprep.subr.bf16.mxu1 %v502_v1 }
   0x5   :  { %440 = vmatprep.mubr.msk.bf16.mxu0 %vm503_vm0, %v502_v1  ;;  %448 = vmatprep.mubr.msk.bf16.mxu1 %vm503_vm0, %v502_v1 }
   0x9   :  { %v475_v0 = vld [vmem:[%s796_s26] sm:$0xff]  }
   0xa   :  { %v58_v2 = vld [vmem:[%s797_s29] sm:$0x1]  ;;  %439 = vmatpush3.bf16.msra.mxu0 %v475_v0 }
   0xb   :  { %452 = vmatprep.subr.bf16.mxu0 %v502_v1 }
   0xc   :  { %22 = vsyncpa [#allocation3], 0  ;;  %v476_v3 = vld [vmem:[%s779_s3] sm:$0xff]   ;;  %v477_v4 = vld [vmem:[%s779_s3 + $0x8] sm:$0xff]   ;;  %v63_v27 = vlaneseq  ;;  %vm141_vm2 = vcmask 261120   ;;  %vm263_vm3 = vcmask 523264  }
   0xd   :  { %441 = vmatmul.mubr.msk.bf16.vlgmr.msra.gmra.mrb[0].mxu0 %vm73_vm1, %v58_v2  ;;  %445 = vmatpush3.bf16.msra.mxu1 %v476_v3  ;;  %v187_v5 = vld [vmem:[%s781_s5] sm:$0xf]  ;;  %v188_v6 = vld [vmem:[%s781_s5 + $0x4] sm:$0xf]  ;;  %v189_v13 = vld [vmem:[%s781_s5 + $0x8] sm:$0xf] }
   0xe   :  { %460 = vmatprep.mubr.msk.bf16.mxu0 %vm503_vm0, %v502_v1  ;;  %446 = vmatprep.subr.bf16.mxu1 %v502_v1  ;;  %v195_v7 = vld [vmem:[%s782_s6] sm:$0xf]  ;;  %v196_v8 = vld [vmem:[%s782_s6 + $0x4] sm:$0xf]  ;;  %v190_v14 = vld [vmem:[%s781_s5 + $0xc] sm:$0xf] }
   0xf   :  { %v203_v9 = vld [vmem:[%s785_s9] sm:$0xf]  ;;  %v204_v10 = vld [vmem:[%s785_s9 + $0x4] sm:$0xf]  ;;  %v197_v15 = vld [vmem:[%s782_s6 + $0x8] sm:$0xf] }
  0x10   :  { %v211_v11 = vmul.bf16 %v203_v9, %v195_v7  ;;  %v212_v12 = vmul.bf16 %v204_v10, %v196_v8  ;;  %v198_v16 = vld [vmem:[%s782_s6 + $0xc] sm:$0xf]  ;;  %v205_v17 = vld [vmem:[%s785_s9 + $0x8] sm:$0xf]  ;;  %v64_v28 = vshrl.u32 %v63_v27, 7  ;;  %s504_s3 = smov [#allocation2]  }
  0x11   :  { %447 = vmatpush3.bf16.msra.mxu1 %v477_v4  ;;  %v206_v18 = vld [vmem:[%s785_s9 + $0xc] sm:$0xf]  ;;  %v213_v21 = vmul.bf16 %v205_v17, %v197_v15  ;;  %v61_v29 = vld [vmem:[%s778_s2] sm:$0x1]  ;;  %v199_v40 = vld [vmem:[%s782_s6 + $0x10] sm:$0xf] }
  0x12   :  { %464 = vmatprep.subr.bf16.mxu1 %v502_v1  ;;  %v219_v19 = vadd.bf16 %v211_v11, %v187_v5  ;;  %v220_v20 = vadd.bf16 %v212_v12, %v188_v6  ;;  %v214_v22 = vmul.bf16 %v206_v18, %v198_v16  ;;  %v62_v30 = vunpack.c.l.bf16 %v61_v29  ;;  %v200_v41 = vld [vmem:[%s782_s6 + $0x14] sm:$0xf]  ;;  %v207_v42 = vld [vmem:[%s785_s9 + $0x10] sm:$0xf]  ;;  %v201_v50 = vld [vmem:[%s782_s6 + $0x18] sm:$0xf] }
  0x13   :  { %v221_v24 = vadd.bf16 %v213_v21, %v189_v13  ;;  %v659_v31 = vsub.s32 0, %v64_v28  ;;  %v208_v43 = vld [vmem:[%s785_s9 + $0x14] sm:$0xf]  ;;  %v215_v44 = vmul.bf16 %v207_v42, %v199_v40  ;;  %v191_v45 = vld [vmem:[%s781_s5 + $0x10] sm:$0xf]  ;;  %s404_s27 = sshll.u32 %s504_s3, 4  ;;  %s405_s27 = int_to_ptr.vmem [resolvable:$true] %s404_s27 }
  0x14   :  { %v417_v23 = vcombine.low %v219_v19, %v220_v20  ;;  %v222_v25 = vadd.bf16 %v214_v22, %v190_v14  ;;  %v192_v46 = vld [vmem:[%s781_s5 + $0x14] sm:$0xf]  ;;  %v216_v47 = vmul.bf16 %v208_v43, %v200_v41  ;;  %v202_v51 = vld [vmem:[%s782_s6 + $0x1c] sm:$0xf]  ;;  %v209_v52 = vld [vmem:[%s785_s9 + $0x18] sm:$0xf]  ;;  %p483_p1 = scmp.lt.s32.totalorder %s405_s27, %s405_s27 }
  0x15   :  { %v66_v32 = vrot.slane %v62_v30, %v659_v31  ;;  %v223_v48 = vadd.bf16 %v215_v44, %v191_v45  ;;  %v210_v53 = vld [vmem:[%s785_s9 + $0x1c] sm:$0xf]  ;;  %v217_v54 = vmul.bf16 %v209_v52, %v201_v50  ;;  %v193_v56 = vld [vmem:[%s781_s5 + $0x18] sm:$0xf]  ;;  %v309_v62 = vld [vmem:[%s787_s11] sm:$0xf] }
  0x16   :  { %453 = vmatpush3.bf16.msra.mxu0 %v417_v23  ;;  %v418_v26 = vcombine.low %v221_v24, %v222_v25  ;;  %v224_v49 = vadd.bf16 %v216_v47, %v192_v46  ;;  %v194_v57 = vld [vmem:[%s781_s5 + $0x1c] sm:$0xf]  ;;  %v218_v58 = vmul.bf16 %v210_v53, %v202_v51  ;;  %v310_v63 = vld [vmem:[%s787_s11 + $0x4] sm:$0xf]  ;;  %v313_v0 = vld [vmem:[%s788_s12] sm:$0xf] }
  0x17   :  { %454 = vmatprep.subr.bf16.mxu0 %v502_v1  ;;  %v225_v59 = vadd.bf16 %v217_v54, %v193_v56  ;;  %v314_v2 = vld [vmem:[%s788_s12 + $0x4] sm:$0xf]  ;;  %v317_v3 = vld [vmem:[%s791_s15] sm:$0xf]  ;;  %v316_v20 = vld [vmem:[%s788_s12 + $0xc] sm:$0xf] }
  0x18   :  { %v419_v55 = vcombine.low %v223_v48, %v224_v49  ;;  %v226_v60 = vadd.bf16 %v218_v58, %v194_v57  ;;  %v318_v4 = vld [vmem:[%s791_s15 + $0x4] sm:$0xf]  ;;  %v321_v5 = vmul.bf16 %v317_v3, %v313_v0  ;;  %v123_v10 = vld [vmem:[%s780_s4] sm:$0x1]  ;;  %v319_v21 = vld [vmem:[%s791_s15 + $0x8] sm:$0xf] }
  0x19   :  { %v322_v6 = vmul.bf16 %v318_v4, %v314_v2  ;;  %v124_v11 = vunpack.c.l.bf16 %v123_v10  ;;  %v320_v22 = vld [vmem:[%s791_s15 + $0xc] sm:$0xf]  ;;  %v311_v24 = vld [vmem:[%s787_s11 + $0x8] sm:$0xf]  ;;  %v229_v30 = vld [vmem:[%s784_s8] sm:$0x1] }
  0x1a   :  { %455 = vmatpush3.bf16.msra.mxu0 %v418_v26  ;;  %v420_v61 = vcombine.low %v225_v59, %v226_v60  ;;  %v325_v7 = vadd.bf16 %v321_v5, %v309_v62  ;;  %v312_v25 = vld [vmem:[%s787_s11 + $0xc] sm:$0xf]  ;;  %v324_v26 = vmul.bf16 %v320_v22, %v316_v20  ;;  %v331_v47 = vld [vmem:[%s790_s14] sm:$0x1]  ;;  %vm396_vm4 = vcmask 25600   ;;  %s478_s14 = scalar_lea.vmem %s405_s27, 32 }
  0x1b   :  { %456 = vmatprep.subr.bf16.mxu0 %v502_v1  ;;  %v326_v8 = vadd.bf16 %v322_v6, %v310_v63  ;;  %v128_v12 = vrot.slane %v124_v11, %v659_v31  ;;  %v333_v48 = vld [vmem:[%s792_s16] sm:$0x1]  ;;  %v332_v49 = vunpack.c.l.bf16 %v331_v47  ;;  %p479_p0 = scmp.ne.s32.totalorder %s405_s27, %s478_s14  ;;  %p484_p2 = scmp.lt.s32.totalorder %s478_s14, %s478_s14 }
  0x1c   :  { %v328_v28 = vadd.bf16 %v324_v26, %v312_v25  ;;  %v334_v50 = vunpack.c.l.bf16 %v333_v48  ;;  %v329_v51 = vld [vmem:[%s789_s13] sm:$0x1] }
  0x1d   :  { %v422_v9 = vcombine.low %v325_v7, %v326_v8  ;;  %v330_v52 = vunpack.c.l.bf16 %v329_v51  ;;  %p485_p3 = por %p484_p2, %p483_p1 }
  0x1e   :  { %457 = vmatpush3.bf16.msra.mxu0 %v419_v55  ;;  %v335_v53 = vmul.f32 %v334_v50, %v332_v49 }
  0x1f   :  { %458 = vmatprep.subr.bf16.mxu0 %v502_v1  ;;  %p486_p4 = pnand %p485_p3, %p479_p0 }
  0x20   :  { %v336_v54 = vadd.f32 %v335_v53, %v330_v52 }
  0x22   :  { %459 = vmatpush3.bf16.msra.mxu0 %v420_v61  ;;  %v340_v55 = vrot.slane %v336_v54, %v659_v31 }
  0xe0   :  { %v111_v33 = vpop.f32.mrb[0].mxu0 }
  0xe1   :  { %v112_v34 = vadd.f32 %v111_v33, %v66_v32  ;;  %v442_v35 = vpop.f32.mrb[1].mxu0  ;;  %v231_v32 = vld [vmem:[%s786_s10] sm:$0x1]  ;;  %v230_v33 = vunpack.c.l.bf16 %v229_v30 }
  0xe2   :  { %v114_v36 = vpop.f32.mrb[2].mxu0  ;;  %v227_v35 = vld [vmem:[%s783_s7] sm:$0x1] }
  0xe3   :  { %v117_v37 = vmax.f32 %v112_v34, 0.0  ;;  %v443_v38 = vpop.f32.mrb[3].mxu0  ;;  %v232_v34 = vunpack.c.l.bf16 %v231_v32  ;;  %v228_v36 = vunpack.c.l.bf16 %v227_v35 }
  0xe5   :  { %v118_v39 = vpack.c.bf16 %v117_v37, %v117_v37  ;;  %v233_v37 = vmul.f32 %v232_v34, %v230_v33 }
  0xe7   :  { %449 = vmatmul.mubr.msk.bf16.vlgmr.msra.gmra.mrb[0].mxu1 %vm141_vm2, %v118_v39  ;;  %v234_v38 = vadd.f32 %v233_v37, %v228_v36 }
  0xe8   :  { %468 = vmatprep.mubr.msk.bf16.mxu1 %vm503_vm0, %v502_v1  ;;  %465 = vmatpush3.bf16.msra.mxu1 %v422_v9 }
  0xe9   :  { %466 = vmatprep.subr.bf16.mxu1 %v502_v1  ;;  %v315_v1 = vld [vmem:[%s788_s12 + $0x8] sm:$0xf]  ;;  %v238_v39 = vrot.slane %v234_v38, %v659_v31 }
  0xea   :  { %v323_v23 = vmul.bf16 %v319_v21, %v315_v1 }
  0xec   :  { %v327_v27 = vadd.bf16 %v323_v23, %v311_v24 }
  0xee   :  { %v423_v29 = vcombine.low %v327_v27, %v328_v28 }
  0xf0   :  { %467 = vmatpush3.bf16.msra.mxu1 %v423_v29 }
 0x1ba   :  { %v179_v13 = vpop.f32.mrb[0].mxu1 }
 0x1bb   :  { %v180_v14 = vadd.f32 %v179_v13, %v128_v12  ;;  %v450_v15 = vpop.f32.mrb[1].mxu1 }
 0x1bc   :  { %v182_v16 = vpop.f32.mrb[2].mxu1 }
 0x1bd   :  { %v185_v17 = vmax.f32 %v180_v14, 0.0  ;;  %v451_v18 = vpop.f32.mrb[3].mxu1 }
 0x1bf   :  { %v186_v19 = vpack.c.bf16 %v185_v17, %v185_v17 }
 0x1c1   :  { %461 = vmatmul.mubr.msk.bf16.vlgmr.msra.gmra.mrb[4].mxu0 %vm263_vm3, %v186_v19 }
 0x294   :  { %v301_v40 = vpop.f32.mrb[4].mxu0 }
 0x295   :  { %v302_v41 = vadd.f32 %v301_v40, %v238_v39  ;;  %v462_v42 = vpop.f32.mrb[5].mxu0 }
 0x296   :  { %v304_v43 = vpop.f32.mrb[6].mxu0 }
 0x297   :  { %v307_v44 = vmax.f32 %v302_v41, 0.0  ;;  %v463_v45 = vpop.f32.mrb[7].mxu0 }
 0x299   :  { %v308_v46 = vpack.c.bf16 %v307_v44, %v307_v44 }
 0x29b   :  { %469 = vmatmul.mubr.msk.bf16.vlgmr.msra.gmra.mrb[4].mxu1 %vm141_vm2, %v308_v46 }
 0x36e   :  { %v390_v56 = vpop.f32.mrb[4].mxu1 }
 0x36f   :  { %v391_v57 = vadd.f32 %v390_v56, %v340_v55  ;;  %v470_v58 = vpop.f32.mrb[5].mxu1 }
 0x370   :  { %v393_v59 = vpop.f32.mrb[6].mxu1 }
 0x371   :  { %v471_v60 = vpop.f32.mrb[7].mxu1  ;;  %397 = vst.msk [vmem:[#allocation2] sm:$0x3] %vm396_vm4, %v391_v57 }
 0x372   :  { %489 = shalt.err (!%p486_p4)
}
 0x373   :  { %s490_s28 = scalar_lea.hbm %s793_s17, 32 }
 0x374   :  { %p491_p5 = scmp.ne.s32.totalorder %s793_s17, %s490_s28  ;;  %p494_p6 = scmp.lt.u32.totalorder %s490_s28, %s793_s17 }
 0x376   :  { %p496_p7 = pnand %p494_p6, %p491_p5 }
 0x378   :  { %499 = shalt.err (!%p496_p7)
}
 0x379   :  { %407 = dma.vmem_to_hbm [thread:$0]  %s405_s27, 32, %s793_s17, [#allocation3]  }
 0x37a   :  { %500 = dma.done.wait [#allocation3], 32  }
 0x37b   :  { %501 = vsyncadd [#allocation3], 4294967264 }
 0x37c   :  { %411 = vsyncpa [#allocation3], 1 }

</bundles_post_ra>
